<compile_context>
chip_gen: v6e
topology: v6e:2x2x1
jax: 0.10.0
libtpu: 0.0.40
codegen_flags: <defaults>
</compile_context>

<pallas_src>
import functools

import jax
import jax.numpy as jnp
from jax.experimental import pallas as pl
from jax.experimental.pallas import tpu as pltpu


_MAX_TILE_B = 4096  # max lanes (batch elems) per grid step; multiple of 128


def _make_ae_kernel(n_enc, n_dec, latent_act, want_xhat, want_z, dim_x):
    """Kernel closure. Ref order:
         x_t, (We0, be0, ...), (Wd0, bd0, ...), out
       All activations are [features, TILE_B] (lane axis = batch tile)."""

    def kernel(*refs):
        x_ref = refs[0]
        enc_refs = refs[1:1 + 2 * n_enc]
        dec_refs = refs[1 + 2 * n_enc:1 + 2 * n_enc + 2 * n_dec]
        out_ref = refs[1 + 2 * n_enc + 2 * n_dec]

        h = x_ref[...]                                  # [dim_x, TILE_B] bf16

        # ----- encoder: h <- W @ h + b ; ReLU between layers (not after the last) -----
        for i in range(n_enc):
            w = enc_refs[2 * i][...]                    # [out, in]  bf16 (MXU-native)
            b = enc_refs[2 * i + 1][...]                # [out, 1]   f32
            h = jnp.dot(w, h.astype(w.dtype), preferred_element_type=jnp.float32) + b
            if i < n_enc - 1:
                h = jnp.maximum(h, 0.0)
        z = h                                           # pre-activation latent

        if want_xhat:
            # ----- latent activation -----
            if latent_act == 'relu':
                h = jnp.maximum(h, 0.0)
            elif latent_act == 'tanh':
                h = jnp.tanh(h)
            # latent_act is None -> identity

            # ----- decoder -----
            for i in range(n_dec):
                w = dec_refs[2 * i][...]
                b = dec_refs[2 * i + 1][...]
                h = jnp.dot(w, h.astype(w.dtype), preferred_element_type=jnp.float32) + b
                if i < n_dec - 1:
                    h = jnp.maximum(h, 0.0)

        # Packed output: rows [0:dim_x] = x_hat, rows [dim_x:] = z when both requested.
        if want_xhat and want_z:
            out_ref[0:dim_x, :] = h.astype(out_ref.dtype)
            out_ref[dim_x:, :] = z.astype(out_ref.dtype)
        elif want_xhat:
            out_ref[...] = h.astype(out_ref.dtype)
        else:
            out_ref[...] = z.astype(out_ref.dtype)

    return kernel


@functools.partial(jax.jit, static_argnames=("latent_act", "mode", "tile_b"))
def autoencoder_forward(x, enc_params, dec_params, latent_act, mode="both", tile_b=None):
    """AutoEncoder forward pass: one jitted program around one Pallas kernel.

    x:          [B, dim_x] float32.
    enc_params: list of (W, b) with W [out, in] (PyTorch layout), b [out].
    dec_params: same, for the decoder.
    latent_act: None | 'relu' | 'tanh'.
    mode:       'both'  -> (x_hat, z_pre) in a single kernel launch
                'x_hat' -> x_hat only
                'z'     -> z_pre only (decoder skipped, its weights never DMA'd)
    """
    if latent_act not in (None, 'relu', 'tanh'):
        raise ValueError('wrong argument latent_act {}'.format(latent_act))
    if mode not in ('both', 'x_hat', 'z'):
        raise ValueError("mode must be 'both', 'x_hat' or 'z'")
    want_xhat = mode in ('both', 'x_hat')
    want_z = mode in ('both', 'z')

    B, dim_x = x.shape
    dim_z = enc_params[-1][0].shape[0]
    out_dtype = x.dtype

    # ---- batch tiling: lane axis = batch tile (multiple of 128) ----
    if tile_b is None:
        # As few / as large tiles as possible, but >=2 tiles when the batch allows so
        # the "parallel" grid axis can shard across both TensorCores on v7x.
        n_tiles_target = max(2, pl.cdiv(B, _MAX_TILE_B)) if B > 128 else 1
        tile_b = min(_MAX_TILE_B, pl.cdiv(pl.cdiv(B, n_tiles_target), 128) * 128)
        tile_b = max(tile_b, 128)
    n_tiles = pl.cdiv(B, tile_b)
    Bp = n_tiles * tile_b

    # Transposed, zero-padded, bf16 input: [dim_x, Bp].  bf16 here is numerically
    # identical to the old path (the kernel cast to bf16 at the first matmul anyway)
    # and halves the input HBM stream.  All of this plumbing fuses under jit.
    x_t = jnp.pad(x.astype(jnp.bfloat16), ((0, Bp - B), (0, 0))).T

    # ---- parameters: bf16 weights for the MXU, f32 column biases ----
    def prep(params):
        return [(w.astype(jnp.bfloat16), b.reshape(-1, 1).astype(jnp.float32))
                for w, b in params]

    enc_p = prep(enc_params)
    dec_p = prep(dec_params) if want_xhat else []     # decoder unused in 'z' mode
    flat_params = [a for pair in (enc_p + dec_p) for a in pair]

    # ---- block specs ----
    # NOTE: every block's sublane dim equals the FULL array dim (dim_x, dim_z, layer
    # widths), so the (8,128) divisibility rule holds even for feature dims that are
    # not multiples of 8.
    def tiled(rows):
        return pl.BlockSpec((rows, tile_b), lambda i: (0, i))

    def resident(arr):
        # Constant index_map -> the pipeline fetches these once and skips re-fetch on
        # later grid steps; the default double-buffer costs only a few KiB, so we do
        # not override pipeline_mode.
        return pl.BlockSpec(arr.shape, lambda i: (0, 0))

    in_specs = [tiled(dim_x)] + [resident(a) for a in flat_params]

    if want_xhat and want_z:
        out_rows = dim_x + dim_z          # packed output block
    elif want_xhat:
        out_rows = dim_x
    else:
        out_rows = dim_z
    out_shape = jax.ShapeDtypeStruct((out_rows, Bp), out_dtype)
    out_specs = tiled(out_rows)

    # ---- VMEM budget: derived from the real footprint, clamped per generation ----
    param_bytes = sum(a.size * a.dtype.itemsize for a in flat_params)
    io_bytes = 2 * dim_x * tile_b * x_t.dtype.itemsize            # dbl-buffered input
    io_bytes += 2 * out_rows * tile_b * out_dtype.itemsize        # dbl-buffered output
    widths = [dim_x, dim_z] + [w.shape[0] for w, _ in enc_p + dec_p]
    scratch_bytes = 4 * max(widths) * tile_b * 4                  # f32 intermediates
    try:
        vmem_cap = int(getattr(pltpu.get_tpu_info(), "vmem_capacity_bytes",
                               64 * 1024 * 1024))
    except Exception:
        vmem_cap = 64 * 1024 * 1024                               # v7x-safe fallback
    vmem_ceiling = max(8 * 1024 * 1024, vmem_cap - 16 * 1024 * 1024)
    vmem_limit = int(min(vmem_ceiling,
                         max(4 * 1024 * 1024,
                             2 * (param_bytes + io_bytes + scratch_bytes))))

    # ---- advisory cost estimate (lets XLA schedule around the tiny custom call) ----
    flops = 2 * sum(w.shape[0] * w.shape[1] for w, _ in enc_p + dec_p) * Bp
    transcendentals = Bp * dim_z if (want_xhat and latent_act == 'tanh') else 0
    bytes_accessed = (x_t.size * x_t.dtype.itemsize + param_bytes
                      + out_rows * Bp * out_dtype.itemsize)
    cost = pl.CostEstimate(flops=flops, transcendentals=transcendentals,
                           bytes_accessed=bytes_accessed)

    kernel = _make_ae_kernel(len(enc_p), len(dec_p), latent_act,
                             want_xhat, want_z, dim_x)

    out = pl.pallas_call(
        kernel,
        out_shape=out_shape,
        grid=(n_tiles,),
        in_specs=in_specs,
        out_specs=out_specs,
        compiler_params=pltpu.CompilerParams(
            dimension_semantics=("parallel",),
            vmem_limit_bytes=vmem_limit,
        ),
        cost_estimate=cost,
    )(x_t, *flat_params)

    # Strip batch padding + transpose back to [B, features] (fused under jit).
    if mode == 'both':
        return out[:dim_x, :B].T, out[dim_x:, :B].T
    return out[:, :B].T


def _init_linear(key, fan_in, fan_out, dtype=jnp.float32):
    """PyTorch nn.Linear default init, PyTorch layout: W [out, in], b [out]."""
    kw, kb = jax.random.split(key)
    bound = 1.0 / (fan_in ** 0.5)
    w = jax.random.uniform(kw, (fan_out, fan_in), dtype, -bound, bound)
    b = jax.random.uniform(kb, (fan_out,), dtype, -bound, bound)
    return w, b


def _build_mlp_params(key, dims):
    params = []
    for i in range(len(dims) - 1):
        key, sub = jax.random.split(key)
        params.append(_init_linear(sub, dims[i], dims[i + 1]))
    return params, key


def _reference_forward(x, enc_params, dec_params, latent_act):
    """Pure-JAX reference mirroring the kernel numerics (bf16 matmul inputs, f32 acc)."""
    def mm(h, w):
        return jnp.dot(h.astype(jnp.bfloat16), w.astype(jnp.bfloat16).T,
                       preferred_element_type=jnp.float32)

    h = x
    for i, (w, b) in enumerate(enc_params):
        h = mm(h, w) + b
        if i < len(enc_params) - 1:
            h = jnp.maximum(h, 0.0)
    z = h
    if latent_act == 'relu':
        h = jnp.maximum(h, 0.0)
    elif latent_act == 'tanh':
        h = jnp.tanh(h)
    for i, (w, b) in enumerate(dec_params):
        h = mm(h, w) + b
        if i < len(dec_params) - 1:
            h = jnp.maximum(h, 0.0)
    return h, z


if __name__ == "__main__":
    # Module config (consistent with the PyTorch __init__ signature).
    dim_x = 16
    dim_z = 8
    encoder_hidden = [32, 32]
    decoder_hidden = [32, 32]
    latent_act = 'tanh'
    batch = 200   # not a tile multiple -> exercises padding; 2 batch tiles (both v7x TCs)

    key = jax.random.PRNGKey(0)
    key, kx = jax.random.split(key)
    x = jax.random.normal(kx, (batch, dim_x), dtype=jnp.float32)

    enc_params, key = _build_mlp_params(key, [dim_x] + encoder_hidden + [dim_z])
    dec_params, key = _build_mlp_params(key, [dim_z] + decoder_hidden + [dim_x])

    # Single jitted program: plumbing + one kernel launch producing BOTH outputs.
    x_hat, z_pre = autoencoder_forward(x, enc_params, dec_params,
                                       latent_act=latent_act, mode="both")
    x_hat, z_pre = jax.block_until_ready((x_hat, z_pre))

    # Latent-only variant (decoder skipped entirely; its weights never DMA'd).
    z_only = autoencoder_forward(x, enc_params, dec_params,
                                 latent_act=latent_act, mode="z")
    z_only = jax.block_until_ready(z_only)

    # Sanity check against the pure-JAX reference.
    x_hat_ref, z_ref = _reference_forward(x, enc_params, dec_params, latent_act)
    assert x_hat.shape == (batch, dim_x) and z_pre.shape == (batch, dim_z)
    assert jnp.allclose(x_hat, x_hat_ref, atol=1e-3, rtol=1e-3)
    assert jnp.allclose(z_pre, z_ref, atol=1e-3, rtol=1e-3)
    assert jnp.allclose(z_only, z_pre, atol=1e-6, rtol=1e-6)

    print("KERNEL_OK")
</pallas_src>

<mosaic_0001>
module attributes {stable_mosaic.version = 11 : i64} {
  func.func @kernel(%arg0: i32, %arg1: memref<16x128xbf16, #tpu.memory_space<vmem>>, %arg2: memref<32x16xbf16, #tpu.memory_space<vmem>>, %arg3: memref<32x1xf32, #tpu.memory_space<vmem>>, %arg4: memref<32x32xbf16, #tpu.memory_space<vmem>>, %arg5: memref<32x1xf32, #tpu.memory_space<vmem>>, %arg6: memref<8x32xbf16, #tpu.memory_space<vmem>>, %arg7: memref<8x1xf32, #tpu.memory_space<vmem>>, %arg8: memref<32x8xbf16, #tpu.memory_space<vmem>>, %arg9: memref<32x1xf32, #tpu.memory_space<vmem>>, %arg10: memref<32x32xbf16, #tpu.memory_space<vmem>>, %arg11: memref<32x1xf32, #tpu.memory_space<vmem>>, %arg12: memref<16x32xbf16, #tpu.memory_space<vmem>>, %arg13: memref<16x1xf32, #tpu.memory_space<vmem>>, %arg14: memref<24x128xf32, #tpu.memory_space<vmem>>) attributes {dimension_semantics = [#tpu.dimension_semantics<parallel>], iteration_bounds = array<i64: 2>, scalar_prefetch = 0 : i64, scratch_operands = 0 : i64, tpu.core_type = #tpu.core_type<tc>, window_params = [{transform_indices = @transform_0, window_bounds = array<i64: 16, 128>}, {pipeline_mode = #tpu.pipeline_mode<synchronous>, transform_indices = @transform_1, window_bounds = array<i64: 32, 16>}, {pipeline_mode = #tpu.pipeline_mode<synchronous>, transform_indices = @transform_2, window_bounds = array<i64: 32, 1>}, {pipeline_mode = #tpu.pipeline_mode<synchronous>, transform_indices = @transform_3, window_bounds = array<i64: 32, 32>}, {pipeline_mode = #tpu.pipeline_mode<synchronous>, transform_indices = @transform_4, window_bounds = array<i64: 32, 1>}, {pipeline_mode = #tpu.pipeline_mode<synchronous>, transform_indices = @transform_5, window_bounds = array<i64: 8, 32>}, {pipeline_mode = #tpu.pipeline_mode<synchronous>, transform_indices = @transform_6, window_bounds = array<i64: 8, 1>}, {pipeline_mode = #tpu.pipeline_mode<synchronous>, transform_indices = @transform_7, window_bounds = array<i64: 32, 8>}, {pipeline_mode = #tpu.pipeline_mode<synchronous>, transform_indices = @transform_8, window_bounds = array<i64: 32, 1>}, {pipeline_mode = #tpu.pipeline_mode<synchronous>, transform_indices = @transform_9, window_bounds = array<i64: 32, 32>}, {pipeline_mode = #tpu.pipeline_mode<synchronous>, transform_indices = @transform_10, window_bounds = array<i64: 32, 1>}, {pipeline_mode = #tpu.pipeline_mode<synchronous>, transform_indices = @transform_11, window_bounds = array<i64: 16, 32>}, {pipeline_mode = #tpu.pipeline_mode<synchronous>, transform_indices = @transform_12, window_bounds = array<i64: 16, 1>}, {transform_indices = @transform_13, window_bounds = array<i64: 24, 128>}]} {
    %c0 = arith.constant 0 : index
    %c0_0 = arith.constant 0 : index
    %0 = vector.load %arg1[%c0, %c0_0] : memref<16x128xbf16, #tpu.memory_space<vmem>>, vector<16x128xbf16>
    %c0_1 = arith.constant 0 : index
    %c0_2 = arith.constant 0 : index
    %1 = vector.load %arg2[%c0_1, %c0_2] : memref<32x16xbf16, #tpu.memory_space<vmem>>, vector<32x16xbf16>
    %c0_3 = arith.constant 0 : index
    %c0_4 = arith.constant 0 : index
    %2 = vector.load %arg3[%c0_3, %c0_4] : memref<32x1xf32, #tpu.memory_space<vmem>>, vector<32x1xf32>
    %cst = arith.constant dense<0.000000e+00> : vector<32x128xf32>
    %3 = tpu.matmul %1, %0, %cst {dimension_numbers = #tpu.dot_dimension_numbers<[1], [0], [0], [1], [0, 0, 1, 1], [], []>} : vector<32x16xbf16>, vector<16x128xbf16>, vector<32x128xf32> -> vector<32x128xf32>
    %4 = vector.broadcast %2 : vector<32x1xf32> to vector<32x128xf32>
    %5 = arith.addf %3, %4 : vector<32x128xf32>
    %cst_5 = arith.constant 0.000000e+00 : f32
    %6 = vector.broadcast %cst_5 : f32 to vector<32x128xf32>
    %7 = arith.maximumf %5, %6 : vector<32x128xf32>
    %c0_6 = arith.constant 0 : index
    %c0_7 = arith.constant 0 : index
    %8 = vector.load %arg4[%c0_6, %c0_7] : memref<32x32xbf16, #tpu.memory_space<vmem>>, vector<32x32xbf16>
    %c0_8 = arith.constant 0 : index
    %c0_9 = arith.constant 0 : index
    %9 = vector.load %arg5[%c0_8, %c0_9] : memref<32x1xf32, #tpu.memory_space<vmem>>, vector<32x1xf32>
    %10 = arith.truncf %7 : vector<32x128xf32> to vector<32x128xbf16>
    %cst_10 = arith.constant dense<0.000000e+00> : vector<32x128xf32>
    %11 = tpu.matmul %8, %10, %cst_10 {dimension_numbers = #tpu.dot_dimension_numbers<[1], [0], [0], [1], [0, 0, 1, 1], [], []>} : vector<32x32xbf16>, vector<32x128xbf16>, vector<32x128xf32> -> vector<32x128xf32>
    %12 = vector.broadcast %9 : vector<32x1xf32> to vector<32x128xf32>
    %13 = arith.addf %11, %12 : vector<32x128xf32>
    %cst_11 = arith.constant 0.000000e+00 : f32
    %14 = vector.broadcast %cst_11 : f32 to vector<32x128xf32>
    %15 = arith.maximumf %13, %14 : vector<32x128xf32>
    %c0_12 = arith.constant 0 : index
    %c0_13 = arith.constant 0 : index
    %16 = vector.load %arg6[%c0_12, %c0_13] : memref<8x32xbf16, #tpu.memory_space<vmem>>, vector<8x32xbf16>
    %c0_14 = arith.constant 0 : index
    %c0_15 = arith.constant 0 : index
    %17 = vector.load %arg7[%c0_14, %c0_15] : memref<8x1xf32, #tpu.memory_space<vmem>>, vector<8x1xf32>
    %18 = arith.truncf %15 : vector<32x128xf32> to vector<32x128xbf16>
    %cst_16 = arith.constant dense<0.000000e+00> : vector<8x128xf32>
    %19 = tpu.matmul %16, %18, %cst_16 {dimension_numbers = #tpu.dot_dimension_numbers<[1], [0], [0], [1], [0, 0, 1, 1], [], []>} : vector<8x32xbf16>, vector<32x128xbf16>, vector<8x128xf32> -> vector<8x128xf32>
    %20 = vector.broadcast %17 : vector<8x1xf32> to vector<8x128xf32>
    %21 = arith.addf %19, %20 : vector<8x128xf32>
    %22 = math.tanh %21 : vector<8x128xf32>
    %c0_17 = arith.constant 0 : index
    %c0_18 = arith.constant 0 : index
    %23 = vector.load %arg8[%c0_17, %c0_18] : memref<32x8xbf16, #tpu.memory_space<vmem>>, vector<32x8xbf16>
    %c0_19 = arith.constant 0 : index
    %c0_20 = arith.constant 0 : index
    %24 = vector.load %arg9[%c0_19, %c0_20] : memref<32x1xf32, #tpu.memory_space<vmem>>, vector<32x1xf32>
    %25 = arith.truncf %22 : vector<8x128xf32> to vector<8x128xbf16>
    %cst_21 = arith.constant dense<0.000000e+00> : vector<32x128xf32>
    %26 = tpu.matmul %23, %25, %cst_21 {dimension_numbers = #tpu.dot_dimension_numbers<[1], [0], [0], [1], [0, 0, 1, 1], [], []>} : vector<32x8xbf16>, vector<8x128xbf16>, vector<32x128xf32> -> vector<32x128xf32>
    %27 = vector.broadcast %24 : vector<32x1xf32> to vector<32x128xf32>
    %28 = arith.addf %26, %27 : vector<32x128xf32>
    %cst_22 = arith.constant 0.000000e+00 : f32
    %29 = vector.broadcast %cst_22 : f32 to vector<32x128xf32>
    %30 = arith.maximumf %28, %29 : vector<32x128xf32>
    %c0_23 = arith.constant 0 : index
    %c0_24 = arith.constant 0 : index
    %31 = vector.load %arg10[%c0_23, %c0_24] : memref<32x32xbf16, #tpu.memory_space<vmem>>, vector<32x32xbf16>
    %c0_25 = arith.constant 0 : index
    %c0_26 = arith.constant 0 : index
    %32 = vector.load %arg11[%c0_25, %c0_26] : memref<32x1xf32, #tpu.memory_space<vmem>>, vector<32x1xf32>
    %33 = arith.truncf %30 : vector<32x128xf32> to vector<32x128xbf16>
    %cst_27 = arith.constant dense<0.000000e+00> : vector<32x128xf32>
    %34 = tpu.matmul %31, %33, %cst_27 {dimension_numbers = #tpu.dot_dimension_numbers<[1], [0], [0], [1], [0, 0, 1, 1], [], []>} : vector<32x32xbf16>, vector<32x128xbf16>, vector<32x128xf32> -> vector<32x128xf32>
    %35 = vector.broadcast %32 : vector<32x1xf32> to vector<32x128xf32>
    %36 = arith.addf %34, %35 : vector<32x128xf32>
    %cst_28 = arith.constant 0.000000e+00 : f32
    %37 = vector.broadcast %cst_28 : f32 to vector<32x128xf32>
    %38 = arith.maximumf %36, %37 : vector<32x128xf32>
    %c0_29 = arith.constant 0 : index
    %c0_30 = arith.constant 0 : index
    %39 = vector.load %arg12[%c0_29, %c0_30] : memref<16x32xbf16, #tpu.memory_space<vmem>>, vector<16x32xbf16>
    %c0_31 = arith.constant 0 : index
    %c0_32 = arith.constant 0 : index
    %40 = vector.load %arg13[%c0_31, %c0_32] : memref<16x1xf32, #tpu.memory_space<vmem>>, vector<16x1xf32>
    %41 = arith.truncf %38 : vector<32x128xf32> to vector<32x128xbf16>
    %cst_33 = arith.constant dense<0.000000e+00> : vector<16x128xf32>
    %42 = tpu.matmul %39, %41, %cst_33 {dimension_numbers = #tpu.dot_dimension_numbers<[1], [0], [0], [1], [0, 0, 1, 1], [], []>} : vector<16x32xbf16>, vector<32x128xbf16>, vector<16x128xf32> -> vector<16x128xf32>
    %43 = vector.broadcast %40 : vector<16x1xf32> to vector<16x128xf32>
    %44 = arith.addf %42, %43 : vector<16x128xf32>
    %c0_34 = arith.constant 0 : index
    %c0_35 = arith.constant 0 : index
    %45 = vector.load %arg14[%c0_34, %c0_35] : memref<24x128xf32, #tpu.memory_space<vmem>>, vector<16x128xf32>
    tpu.vector_store %arg14[%c0_34, %c0_35], %44 {strides = array<i32>} : memref<24x128xf32, #tpu.memory_space<vmem>>, vector<16x128xf32>,
    %c16 = arith.constant 16 : index
    %c0_36 = arith.constant 0 : index
    %46 = vector.load %arg14[%c16, %c0_36] : memref<24x128xf32, #tpu.memory_space<vmem>>, vector<8x128xf32>
    tpu.vector_store %arg14[%c16, %c0_36], %21 {strides = array<i32>} : memref<24x128xf32, #tpu.memory_space<vmem>>, vector<8x128xf32>,
    return
  }
  func.func @transform_0(%arg0: i32) -> (i32, i32) {
    %c0_i32 = arith.constant 0 : i32
    %c0_i32_0 = arith.constant 0 : i32
    return %c0_i32, %arg0 : i32, i32
  }
  func.func @transform_1(%arg0: i32) -> (i32, i32) {
    %c0_i32 = arith.constant 0 : i32
    %c0_i32_0 = arith.constant 0 : i32
    %c0_i32_1 = arith.constant 0 : i32
    return %c0_i32, %c0_i32_0 : i32, i32
  }
  func.func @transform_2(%arg0: i32) -> (i32, i32) {
    %c0_i32 = arith.constant 0 : i32
    %c0_i32_0 = arith.constant 0 : i32
    %c0_i32_1 = arith.constant 0 : i32
    return %c0_i32, %c0_i32_0 : i32, i32
  }
  func.func @transform_3(%arg0: i32) -> (i32, i32) {
    %c0_i32 = arith.constant 0 : i32
    %c0_i32_0 = arith.constant 0 : i32
    %c0_i32_1 = arith.constant 0 : i32
    return %c0_i32, %c0_i32_0 : i32, i32
  }
  func.func @transform_4(%arg0: i32) -> (i32, i32) {
    %c0_i32 = arith.constant 0 : i32
    %c0_i32_0 = arith.constant 0 : i32
    %c0_i32_1 = arith.constant 0 : i32
    return %c0_i32, %c0_i32_0 : i32, i32
  }
  func.func @transform_5(%arg0: i32) -> (i32, i32) {
    %c0_i32 = arith.constant 0 : i32
    %c0_i32_0 = arith.constant 0 : i32
    %c0_i32_1 = arith.constant 0 : i32
    return %c0_i32, %c0_i32_0 : i32, i32
  }
  func.func @transform_6(%arg0: i32) -> (i32, i32) {
    %c0_i32 = arith.constant 0 : i32
    %c0_i32_0 = arith.constant 0 : i32
    %c0_i32_1 = arith.constant 0 : i32
    return %c0_i32, %c0_i32_0 : i32, i32
  }
  func.func @transform_7(%arg0: i32) -> (i32, i32) {
    %c0_i32 = arith.constant 0 : i32
    %c0_i32_0 = arith.constant 0 : i32
    %c0_i32_1 = arith.constant 0 : i32
    return %c0_i32, %c0_i32_0 : i32, i32
  }
  func.func @transform_8(%arg0: i32) -> (i32, i32) {
    %c0_i32 = arith.constant 0 : i32
    %c0_i32_0 = arith.constant 0 : i32
    %c0_i32_1 = arith.constant 0 : i32
    return %c0_i32, %c0_i32_0 : i32, i32
  }
  func.func @transform_9(%arg0: i32) -> (i32, i32) {
    %c0_i32 = arith.constant 0 : i32
    %c0_i32_0 = arith.constant 0 : i32
    %c0_i32_1 = arith.constant 0 : i32
    return %c0_i32, %c0_i32_0 : i32, i32
  }
  func.func @transform_10(%arg0: i32) -> (i32, i32) {
    %c0_i32 = arith.constant 0 : i32
    %c0_i32_0 = arith.constant 0 : i32
    %c0_i32_1 = arith.constant 0 : i32
    return %c0_i32, %c0_i32_0 : i32, i32
  }
  func.func @transform_11(%arg0: i32) -> (i32, i32) {
    %c0_i32 = arith.constant 0 : i32
    %c0_i32_0 = arith.constant 0 : i32
    %c0_i32_1 = arith.constant 0 : i32
    return %c0_i32, %c0_i32_0 : i32, i32
  }
  func.func @transform_12(%arg0: i32) -> (i32, i32) {
    %c0_i32 = arith.constant 0 : i32
    %c0_i32_0 = arith.constant 0 : i32
    %c0_i32_1 = arith.constant 0 : i32
    return %c0_i32, %c0_i32_0 : i32, i32
  }
  func.func @transform_13(%arg0: i32) -> (i32, i32) {
    %c0_i32 = arith.constant 0 : i32
    %c0_i32_0 = arith.constant 0 : i32
    return %c0_i32, %arg0 : i32, i32
  }
}

</mosaic_0001>

<bundles_post_ra>
// kernel: autoencoder_forward.1
= control target key start
LH: loop header
LB: loop body
LE: loop exit
PB: predicated region body
PF: predicated region fallthrough
CT: control target
= control target key end

     0   :  { %s1353_s25 = smov 0   ;;  %s1355_s26 = smov 0   ;;  %s1530_s0 = inlined_call_operand.vmem [shape: bf16[16,256], index: 0, kind: input, shape index: {}]   ;;  %s1531_s1 = inlined_call_operand.vmem [shape: bf16[32,16], index: 1, kind: input, shape index: {}]   ;;  %s1532_s2 = inlined_call_operand.vmem [shape: f32[32,1], index: 2, kind: input, shape index: {}]   ;;  %s1533_s3 = inlined_call_operand.vmem [shape: bf16[32,32], index: 3, kind: input, shape index: {}]   ;;  %s1534_s4 = inlined_call_operand.vmem [shape: f32[32,1], index: 4, kind: input, shape index: {}]   ;;  %s1535_s5 = inlined_call_operand.vmem [shape: bf16[8,32], index: 5, kind: input, shape index: {}]   ;;  %s1536_s6 = inlined_call_operand.vmem [shape: f32[8,1], index: 6, kind: input, shape index: {}]   ;;  %s1537_s7 = inlined_call_operand.vmem [shape: bf16[32,8], index: 7, kind: input, shape index: {}]   ;;  %s1538_s8 = inlined_call_operand.vmem [shape: f32[32,1], index: 8, kind: input, shape index: {}]   ;;  %s1539_s9 = inlined_call_operand.vmem [shape: bf16[32,32], index: 9, kind: input, shape index: {}]   ;;  %s1540_s10 = inlined_call_operand.vmem [shape: f32[32,1], index: 10, kind: input, shape index: {}]   ;;  %s1541_s11 = inlined_call_operand.vmem [shape: bf16[16,32], index: 11, kind: input, shape index: {}]   ;;  %s1542_s12 = inlined_call_operand.vmem [shape: f32[16,1], index: 12, kind: input, shape index: {}]   ;;  %s1543_s13 = inlined_call_operand.vmem [shape: f32[24,256], index: 13, kind: output, shape index: {}]  }
   0x1   :  { %s1357_s27 = smov 0  }
   0x2 LB: > { %s1544_s28 = sadd.s32 4294967295, %s1278_s27   ;;  %s1370_s29 = sadd.s32 1, %s1278_s27   ;;  %s1278_s27 = sphi %s1357_s27, %s1549_s27   ;;  %s1274_s26 = sphi %s1355_s26, %s1548_s26   ;;  %s1270_s25 = sphi %s1353_s25, %s1547_s25  }
   0x3   : > { %s27_s30 = ssub.s32 %s1278_s27, %s1370_s29  ;;  %s30_s14 = sadd.s32 1, %s1274_s26 }
   0x4   : > { %p28_p0 = scmp.eq.s32.totalorder %s27_s30, 0  ;;  %p37_p1 = scmp.ne.s32.totalorder %s1274_s26, %s1270_s25 }
   0x5   : > { %p38_p2 = scmp.eq.s32.totalorder %s1278_s27, 0  ;;  %p319_p3 = scmp.eq.s32.totalorder %s1544_s28, 1 }
   0x6   : > { %s1381_s15 = scalar_select %p28_p0, %s1274_s26, %s30_s14  }
   0x7   : > { %p39_p4 = por %p38_p2, %p37_p1  ;;  %p1383_p5 = por %p319_p3, %p37_p1 }
   0x8   : > { %p1121_p6 = scmp.ge.s32.totalorder %s1278_s27, 2 }
   0xa   : > { %377 = sbr.rel (%p1121_p6) target bundleno = 20 (0x14), region = 64 }
   0xf   : > { %380 = sbr.rel (!%p39_p4) target bundleno = 20 (0x14), region = 68  ;;  %s382_s17 = sand.u32 (%p39_p4), 1, %s1274_s26  }
  0x10   : > { %s1123_s18 = sshll.u32 (%p39_p4), %s1278_s27, 2  ;;  %s1122_s19 = sshll.u32 (%p39_p4), %s382_s17, 3 }
  0x11   : > { %s386_s22 = scalar_lea.vmem (%p39_p4), %s1530_s0, %s1123_s18  ;;  %s384_s23 = scalar_lea.vmem (%p39_p4), [#allocation2], %s1122_s19 }
  0x12   : > { %v403_v0 = vld [vmem:[%s386_s22] sm:$0xf] (%p39_p4)  ;;  %v405_v1 = vld [vmem:[%s386_s22 + $0x8] sm:$0xf] (%p39_p4) }
  0x13   : > { %404 = vst [vmem:[%s384_s23] sm:$0xf] (%p39_p4), %v403_v0  ;;  %406 = vst [vmem:[%s384_s23 + $0x4] sm:$0xf] (%p39_p4), %v405_v1 }
  0x14 PF: > { %p1124_p7 = scmp.ge.s32.totalorder %s1278_s27, 1  ;;  %p433_p8 = scmp.lt.s32.totalorder %s1278_s27, 3 }
  0x16   : > { %p434_p9 = pnand %p1124_p7, %p433_p8 }
  0x17   : > { %s440_s24 = sand.u32 (!%p434_p9), 1, %s1270_s25  }
  0x18   : > { %437 = sbr.rel (%p434_p9) target bundleno = 1301 (0x515), region = 109  ;;  %s1125_s17 = sshll.u32 (!%p434_p9), %s440_s24, 3 }
  0x19   : > { %s442_s20 = scalar_lea.vmem (!%p434_p9), [#allocation2], %s1125_s17  ;;  %s1214_s17 = smul.u32 (!%p434_p9), 24, %s440_s24 }
  0x1b   : > { %s1485_s18 = scalar_lea.vmem (!%p434_p9), [#allocation3], %s1214_s17 }
  0x1d   : > { %v1245_v2 = vld [vmem:[%s1531_s1] sm:$0xff]   ;;  %vm529_vm0 = vcmask 130048   ;;  %v491_v3 = vld [vmem:[%s1532_s2 + $0x10] sm:$0xff]  ;;  %v1280_v5 = vmov 0   ;;  %v1246_v7 = vld [vmem:[%s1531_s1 + $0x8] sm:$0xff]   ;;  %vm629_vm1 = vcmask 261120  }
  0x1e   : > { %1171 = vmatprep.mubr.msk.bf16.mxu0 %vm529_vm0, %v1245_v2  ;;  %v1244_v4 = vld [vmem:[%s442_s20] sm:$0xff]   ;;  %1242 = vset.pattern.permute.xlu0 %v1280_v5  ;;  %v492_v8 = vld [vmem:[%s1532_s2 + $0x18] sm:$0xff]  ;;  %v595_v10 = vld [vmem:[%s1534_s4 + $0x10] sm:$0xff]  ;;  %v1281_v45 = vmov 0.0   ;;  %vm1282_vm2 = vmmov 0   ;;  %vm781_vm3 = vcmask 64512  }
  0x1f   : > { %1243 = vset.pattern.permute.xlu1 %v1280_v5  ;;  %505 = vperm.xlu0 %1242, %v491_v3   ;;  %v489_v6 = vld [vmem:[%s1532_s2] sm:$0xff]  ;;  %v490_v9 = vld [vmem:[%s1532_s2 + $0x8] sm:$0xff]  ;;  %v596_v11 = vld [vmem:[%s1534_s4 + $0x18] sm:$0xff]  ;;  %vm788_vm4 = vcmask 1043456   ;;  %s1546_s30 = sadd.s32 (%p1383_p5), 4294967295, %s1278_s27  }
  0x20   : > { %1169 = vmatprep.subr.bf16.mxu0 %v1244_v4  ;;  %495 = vperm.xlu1 %1243, %v489_v6   ;;  %v593_v12 = vld [vmem:[%s1534_s4] sm:$0xff]  ;;  %v594_v13 = vld [vmem:[%s1534_s4 + $0x8] sm:$0xff]  ;;  %v748_v15 = vld [vmem:[%s1538_s8 + $0x10] sm:$0xff]  ;;  %s1146_s14 = sshll.u32 (%p1383_p5), %s1546_s30, 3 }
  0x21   : > { %1170 = vmatpush3.bf16.msra.mxu0 %v1244_v4  ;;  %v690_v14 = vld [vmem:[%s1536_s6] sm:$0xff]  ;;  %v749_v16 = vld [vmem:[%s1538_s8 + $0x18] sm:$0xff]  ;;  %v747_v18 = vld [vmem:[%s1538_s8 + $0x8] sm:$0xff]  ;;  %s1020_s20 = scalar_lea.vmem (%p1383_p5), %s1543_s13, %s1146_s14 }
  0x22   : > { %v746_v17 = vld [vmem:[%s1538_s8] sm:$0xff]  ;;  %v851_v19 = vld [vmem:[%s1540_s10 + $0x10] sm:$0xff]  ;;  %v852_v20 = vld [vmem:[%s1540_s10 + $0x18] sm:$0xff]  ;;  %1183 = vmatprep.subr.bf16.mxu0 %v1281_v45 }
  0x23   : > { %510 = vperm.xlu0 %1242, %v492_v8   ;;  %v849_v21 = vld [vmem:[%s1540_s10] sm:$0xff]  ;;  %v850_v22 = vld [vmem:[%s1540_s10 + $0x8] sm:$0xff] }
  0x24   : > { %1172 = vmatmul.mubr.msk.bf16.vlgmr.msra.gmra.mxu0 %vm529_vm0, %v1246_v7  ;;  %500 = vperm.xlu1 %1243, %v490_v9   ;;  %v946_v23 = vld [vmem:[%s1542_s12] sm:$0xff]  ;;  %v947_v24 = vld [vmem:[%s1542_s12 + $0x8] sm:$0xff] }
  0x25   : > { %v1247_v25 = vld [vmem:[%s1533_s3] sm:$0xff]   ;;  %v1248_v44 = vld [vmem:[%s1533_s3 + $0x8] sm:$0xff]   ;;  %1187 = vmatprep.mubr.msk.bf16.mxu0 %vm1282_vm2, %v1281_v45 }
  0x26   : > { %1179 = vmatprep.mubr.msk.bf16.mxu1 %vm629_vm1, %v1247_v25  ;;  %v689_v0 = vld [vmem:[%s1535_s5] sm:$0xf] }
  0x27   : > { %611 = vperm.xlu0 %1242, %v595_v10   ;;  %v1249_v1 = vld [vmem:[%s1537_s7] sm:$0xff]  }
  0x28   : > { %616 = vperm.xlu1 %1243, %v596_v11   ;;  %v1250_v11 = vld [vmem:[%s1537_s7 + $0x8] sm:$0xff]  }
  0x2b   : > { %601 = vperm.xlu0 %1242, %v593_v12   ;;  %v1251_v12 = vld [vmem:[%s1539_s9] sm:$0xff]  }
  0x2c   : > { %606 = vperm.xlu1 %1243, %v594_v13  }
  0x2f   : > { %695 = vperm.xlu0 %1242, %v690_v14  }
  0x30   : > { %763 = vperm.xlu1 %1243, %v748_v15  }
  0x33   : > { %768 = vperm.xlu0 %1242, %v749_v16  }
  0x34   : > { %753 = vperm.xlu1 %1243, %v746_v17  }
  0x37   : > { %758 = vperm.xlu0 %1242, %v747_v18  }
  0x38   : > { %867 = vperm.xlu1 %1243, %v851_v19  }
  0x3b   : > { %872 = vperm.xlu0 %1242, %v852_v20  }
  0x3c   : > { %857 = vperm.xlu1 %1243, %v849_v21  }
  0x3f   : > { %862 = vperm.xlu0 %1242, %v850_v22  }
  0x40   : > { %952 = vperm.xlu1 %1243, %v946_v23  }
  0x43   : > { %957 = vperm.xlu0 %1242, %v947_v24  }
  0x9a   : > { %v506_v26 = vpop.permute.xlu0 %505 }
  0x9b   : > { %v496_v27 = vpop.permute.xlu1 %495 }
  0x9e   : > { %v511_v31 = vpop.permute.xlu0 %510 }
  0x9f   : > { %v501_v35 = vpop.permute.xlu1 %500 }
  0xa2   : > { %v612_v46 = vpop.permute.xlu0 %611 }
  0xa3   : > { %v617_v47 = vpop.permute.xlu1 %616 }
  0xa6   : > { %v602_v52 = vpop.permute.xlu0 %601 }
  0xa7   : > { %v607_v54 = vpop.permute.xlu1 %606 }
  0xaa   : > { %v696_v2 = vpop.permute.xlu0 %695 }
  0xab   : > { %v764_v13 = vpop.permute.xlu1 %763 }
  0xae   : > { %v769_v14 = vpop.permute.xlu0 %768 }
  0xaf   : > { %v754_v18 = vpop.permute.xlu1 %753 }
  0xb2   : > { %v759_v22 = vpop.permute.xlu0 %758 }
  0xe4   : > { %v1173_v28 = vpop.f32.mrf.mxu0 }
  0xe5   : > { %v579_v30 = vadd.f32 %v1173_v28, %v506_v26 }
  0xe6   : > { %v570_v29 = vpop.f32.mrf.mxu0 }
  0xe7   : > { %v571_v33 = vadd.f32 %v570_v29, %v496_v27  ;;  %v587_v37 = vmax.f32 %v579_v30, 0.0 }
  0xe8   : > { %v1174_v32 = vpop.f32.mrf.mxu0 }
  0xe9   : > { %v582_v34 = vadd.f32 %v1174_v32, %v511_v31  ;;  %v585_v40 = vmax.f32 %v571_v33, 0.0  ;;  %v1252_v31 = vld [vmem:[%s1539_s9 + $0x8] sm:$0xff]   ;;  %v868_v32 = vpop.permute.xlu1 %867  ;;  %v873_v33 = vpop.permute.xlu0 %872 }
  0xea   : > { %v573_v36 = vpop.f32.mrf.mxu0 }
  0xeb   : > { %v588_v38 = vmax.f32 %v582_v34, 0.0  ;;  %v574_v39 = vadd.f32 %v573_v36, %v501_v35 }
  0xed   : > { %v586_v41 = vmax.f32 %v574_v39, 0.0  ;;  %v598_v42 = vpack.c.bf16 %v588_v38, %v587_v37  ;;  %v858_v38 = vpop.permute.xlu1 %857 }
  0xef   : > { %v597_v43 = vpack.c.bf16 %v586_v41, %v585_v40  ;;  %1175 = vmatprep.subr.bf16.mxu1 %v598_v42  ;;  %v863_v40 = vpop.permute.xlu0 %862 }
  0xf0   : > { %1176 = vmatpush3.bf16.msra.mxu1 %v598_v42 }
  0xf1   : > { %1177 = vmatprep.subr.bf16.mxu1 %v597_v43 }
  0xf4   : > { %1178 = vmatpush3.bf16.msra.mxu1 %v597_v43 }
  0xf7   : > { %1180 = vmatmul.mubr.msk.bf16.vlgmr.msra.gmra.mxu1 %vm629_vm1, %v1248_v44 }
  0xf8   : > { %1193 = vmatprep.mubr.msk.bf16.mxu1 %vm781_vm3, %v1249_v1 }
 0x1b7   : > { %v1181_v48 = vpop.f32.mrf.mxu1 }
 0x1b8   : > { %v679_v50 = vadd.f32 %v1181_v48, %v612_v46 }
 0x1b9   : > { %v670_v49 = vpop.f32.mrf.mxu1 }
 0x1ba   : > { %v687_v56 = vmax.f32 %v679_v50, 0.0  ;;  %v671_v57 = vadd.f32 %v670_v49, %v602_v52  ;;  %v953_v52 = vpop.permute.xlu1 %952 }
 0x1bb   : > { %v1182_v51 = vpop.f32.mrf.mxu1 }
 0x1bc   : > { %v682_v53 = vadd.f32 %v1182_v51, %v617_v47  ;;  %v685_v62 = vmax.f32 %v671_v57, 0.0  ;;  %v1253_v51 = vld [vmem:[%s1541_s11] sm:$0xff]  }
 0x1bd   : > { %v673_v55 = vpop.f32.mrf.mxu1 }
 0x1be   : > { %v688_v58 = vmax.f32 %v682_v53, 0.0  ;;  %v674_v59 = vadd.f32 %v673_v55, %v607_v54 }
 0x1c0   : > { %v692_v60 = vpack.c.bf16 %v688_v58, %v687_v56  ;;  %v686_v61 = vmax.f32 %v674_v59, 0.0  ;;  %v958_v56 = vpop.permute.xlu0 %957 }
 0x1c2   : > { %1184 = vmatpush3.bf16.msra.mxu0 %v692_v60  ;;  %v691_v63 = vpack.c.bf16 %v686_v61, %v685_v62 }
 0x1c3   : > { %1185 = vmatprep.subr.bf16.mxu0 %v1281_v45 }
 0x1c6   : > { %1186 = vmatpush3.bf16.msra.mxu0 %v691_v63 }
 0x1c9   : > { %1188 = vmatmul.mubr.msk.bf16.vlgmr.msra.gmra.mxu0 %vm629_vm1, %v689_v0 }
 0x1ca   : > { %1201 = vmatprep.mubr.msk.bf16.mxu0 %vm629_vm1, %v1251_v12 }
 0x289   : > { %v735_v3 = vpop.f32.mrf.mxu0 }
 0x28a   : > { %v736_v4 = vadd.f32 %v735_v3, %v696_v2 }
 0x28b   : > { %v1189_v5 = vpop.f32.mrf.mxu0 }
 0x28c   : > { %1254 = vtanh.f32 %v736_v4  ;;  %1011 = vst [vmem:[%s1485_s18 + $0x10] sm:$0xff] %v736_v4 }
 0x28d   : > { %v738_v6 = vpop.f32.mrf.mxu0 }
 0x28f   : > { %v1190_v7 = vpop.f32.mrf.mxu0 }
 0x293   : > { %v1057_v61 = vld [vmem:[%s1485_s18 + $0x10] sm:$0xff] (%p1383_p5) }
 0x294   : > { %1058 = vst [vmem:[%s1020_s20 + $0x20] sm:$0xff] (%p1383_p5), %v1057_v61 }
 0x299   : > { %v1255_v8 = vpop.eup %1254 }
 0x29a   : > { %v750_v9 = vpack.c.bf16 %v1255_v8, %v1255_v8 }
 0x29c   : > { %1213 = vmatprep.subr.msk.bf16.mxu1 %vm788_vm4, %v750_v9  ;;  %v790_v10 = vsel %vm788_vm4, %v750_v9, 0 }
 0x29d   : > { %1192 = vmatpush3.bf16.msra.mxu1 %v790_v10 }
 0x29e   : > { %1205 = vmatprep.subr.bf16.mxu1 %v1281_v45 }
 0x2a0   : > { %1194 = vmatmul.mubr.msk.bf16.vlgmr.msra.gmra.mxu1 %vm781_vm3, %v1250_v11 }
 0x2a1   : > { %1209 = vmatprep.mubr.msk.bf16.mxu1 %vm1282_vm2, %v1281_v45 }
 0x360   : > { %v1195_v15 = vpop.f32.mrf.mxu1 }
 0x361   : > { %v835_v17 = vadd.f32 %v1195_v15, %v764_v13 }
 0x362   : > { %v826_v16 = vpop.f32.mrf.mxu1 }
 0x363   : > { %v827_v20 = vadd.f32 %v826_v16, %v754_v18  ;;  %v843_v24 = vmax.f32 %v835_v17, 0.0 }
 0x364   : > { %v1196_v19 = vpop.f32.mrf.mxu1 }
 0x365   : > { %v838_v21 = vadd.f32 %v1196_v19, %v769_v14  ;;  %v841_v27 = vmax.f32 %v827_v20, 0.0 }
 0x366   : > { %v829_v23 = vpop.f32.mrf.mxu1 }
 0x367   : > { %v844_v25 = vmax.f32 %v838_v21, 0.0  ;;  %v830_v26 = vadd.f32 %v829_v23, %v759_v22 }
 0x369   : > { %v854_v28 = vpack.c.bf16 %v844_v25, %v843_v24  ;;  %v842_v29 = vmax.f32 %v830_v26, 0.0 }
 0x36b   : > { %v853_v30 = vpack.c.bf16 %v842_v29, %v841_v27  ;;  %1197 = vmatprep.subr.bf16.mxu0 %v854_v28 }
 0x36c   : > { %1198 = vmatpush3.bf16.msra.mxu0 %v854_v28 }
 0x36d   : > { %1199 = vmatprep.subr.bf16.mxu0 %v853_v30 }
 0x370   : > { %1200 = vmatpush3.bf16.msra.mxu0 %v853_v30 }
 0x373   : > { %1202 = vmatmul.mubr.msk.bf16.vlgmr.msra.gmra.mxu0 %vm629_vm1, %v1252_v31 }
 0x433   : > { %v1203_v34 = vpop.f32.mrf.mxu0 }
 0x434   : > { %v934_v36 = vadd.f32 %v1203_v34, %v868_v32 }
 0x435   : > { %v925_v35 = vpop.f32.mrf.mxu0 }
 0x436   : > { %v942_v42 = vmax.f32 %v934_v36, 0.0  ;;  %v926_v43 = vadd.f32 %v925_v35, %v858_v38 }
 0x437   : > { %v1204_v37 = vpop.f32.mrf.mxu0 }
 0x438   : > { %v937_v39 = vadd.f32 %v1204_v37, %v873_v33  ;;  %v940_v49 = vmax.f32 %v926_v43, 0.0 }
 0x439   : > { %v928_v41 = vpop.f32.mrf.mxu0 }
 0x43a   : > { %v943_v44 = vmax.f32 %v937_v39, 0.0  ;;  %v929_v46 = vadd.f32 %v928_v41, %v863_v40 }
 0x43c   : > { %v949_v47 = vpack.c.bf16 %v943_v44, %v942_v42  ;;  %v941_v48 = vmax.f32 %v929_v46, 0.0 }
 0x43e   : > { %1206 = vmatpush3.bf16.msra.mxu1 %v949_v47  ;;  %v948_v50 = vpack.c.bf16 %v941_v48, %v940_v49 }
 0x43f   : > { %1207 = vmatprep.subr.bf16.mxu1 %v1281_v45 }
 0x442   : > { %1208 = vmatpush3.bf16.msra.mxu1 %v948_v50 }
 0x445   : > { %1210 = vmatmul.mubr.msk.bf16.vlgmr.msra.gmra.mxu1 %vm629_vm1, %v1253_v51 }
 0x505   : > { %v1002_v53 = vpop.f32.mrf.mxu1 }
 0x506   : > { %v1003_v54 = vadd.f32 %v1002_v53, %v953_v52 }
 0x507   : > { %v1211_v55 = vpop.f32.mrf.mxu1 }
 0x508   : > { %1009 = vst [vmem:[%s1485_s18] sm:$0xff] %v1003_v54  ;;  %1018 = sbr.rel (!%p1383_p5) target bundleno = 1301 (0x515), region = 117 }
 0x509   : > { %v1005_v57 = vpop.f32.mrf.mxu1 }
 0x50a   : > { %v1006_v58 = vadd.f32 %v1005_v57, %v958_v56 }
 0x50b   : > { %v1212_v59 = vpop.f32.mrf.mxu1 }
 0x50c   : > { %1010 = vst [vmem:[%s1485_s18 + $0x8] sm:$0xff] %v1006_v58 }
 0x50f   : > { %v1053_v45 = vld [vmem:[%s1485_s18] sm:$0xff] }
 0x510   : > { %1054 = vst [vmem:[%s1020_s20] sm:$0xff] %v1053_v45 }
 0x513   : > { %v1055_v60 = vld [vmem:[%s1485_s18 + $0x8] sm:$0xff] }
 0x514   : > { %1056 = vst [vmem:[%s1020_s20 + $0x10] sm:$0xff] %v1055_v60 }
 0x515 PF: > { %p20_p10 = scmp.ge.s32.totalorder %s1370_s29, 4   ;;  %s1547_s25 = smov %s1274_s26 }
 0x516   : > { %s1548_s26 = smov %s1381_s15  ;;  %s1549_s27 = smov %s1370_s29 }
 0x517   :  { %22 = sbr.rel (!%p20_p10) target bundleno = 2 (0x2), region = 186 }

</bundles_post_ra>
